<compile_context>
chip_gen: v6e
topology: v6e:2x2x1
jax: 0.10.0
libtpu: 0.0.40
codegen_flags: <defaults>
</compile_context>

<pallas_src>
import functools

import jax
import jax.numpy as jnp
from jax.experimental import pallas as pl
from jax.experimental.pallas import tpu as pltpu


def _round_up(x, m):
    return ((x + m - 1) // m) * m


def _adaptive_gating_kernel(h_ref, w1_ref, b1_ref, w2_ref, b2_row_ref,
                            w2t_ref, b2_col_ref, gh_ref, gv_ref, *,
                            gate_indices, gv_transposed, scatter_via_mxu):
    H = h_ref.shape[-1]
    G = len(gate_indices)

    h = h_ref[...].astype(jnp.float32)                         # [TB, H]

    # gate_mlp: Linear(H, 32) -> ReLU -> Linear(32, G), f32 accumulation.
    z = jnp.dot(h, w1_ref[...], preferred_element_type=jnp.float32)
    z = jnp.maximum(z + b1_ref[...], 0.0)                      # [TB, 32]
    gv = jnp.dot(z, w2_ref[...], preferred_element_type=jnp.float32)
    gv = gv + b2_row_ref[...]                                  # [TB, G]

    if gv_transposed:
        # Lane-dense store: gv_t[G, TB] via contraction on the last dims of
        # W2^T [G, 32] and z [TB, 32] (same pattern as q @ k^T), then dense vst.
        gv_t = jax.lax.dot_general(
            w2t_ref[...], z, (((1,), (1,)), ((), ())),
            preferred_element_type=jnp.float32)                # [G, TB]
        gv_ref[...] = (gv_t + b2_col_ref[...]).astype(gv_ref.dtype)
    else:
        gv_ref[...] = gv.astype(gv_ref.dtype)

    if scatter_via_mxu:
        # One MXU matmul replaces G selects+adds per vreg.  S is built in-kernel
        # from iotas (no HBM input); duplicate indices accumulate in the matmul.
        row = jax.lax.broadcasted_iota(jnp.int32, (G, H), 0)
        col = jax.lax.broadcasted_iota(jnp.int32, (G, H), 1)
        s = jnp.zeros((G, H), jnp.float32)
        for i, idx in enumerate(gate_indices):
            s = s + jnp.where((row == i) & (col == idx), 1.0, 0.0)
        gh = h + jnp.dot(gv, s, preferred_element_type=jnp.float32)
    else:
        # VPU scatter-add: one one-hot lane-mask select+add per gate index.
        # Duplicate indices accumulate naturally (one add per i), matching the
        # sequential `+=` loop of the PyTorch module.
        lane = jax.lax.broadcasted_iota(jnp.int32, (1, H), 1)
        gh = h
        for i, idx in enumerate(gate_indices):
            gh = gh + jnp.where(lane == idx, gv[:, i:i + 1], 0.0)
    gh_ref[...] = gh.astype(gh_ref.dtype)
    # TODO(synk): the PyTorch forward prints gate_values[0] host-side; no clean
    # in-kernel equivalent (pl.debug_print would spam per grid step), omitted.


@functools.partial(jax.jit, static_argnames=("gate_indices", "block_b",
                                             "scatter_via_mxu", "donate_hidden"))
def adaptive_gating(hidden, w1, b1, w2, b2, gate_indices, block_b=4096,
                    scatter_via_mxu=False, donate_hidden=False):
    B, H = hidden.shape
    MLP = w1.shape[1]
    gate_indices = tuple(int(i) for i in gate_indices)
    G = len(gate_indices)
    assert all(0 <= i < H for i in gate_indices), "gate index out of range"

    in_item = jnp.dtype(hidden.dtype).itemsize
    row_mult = 8 if in_item >= 4 else 16

    # Batch tile: big enough (~1 MiB blocks) to amortize per-step overhead,
    # but capped at ~half the batch so large B always yields >= 2 grid steps
    # (lets the "parallel" axis shard across v7x's two TensorCores).
    half = pl.cdiv(B, 2)
    if half >= 128:
        tb = _round_up(min(block_b, half), 128)
    else:
        tb = _round_up(min(block_b, half), row_mult)
    if tb >= B:
        tb = B                         # single tile: block == full array (legal)
    grid = (pl.cdiv(B, tb),)

    # Lane-dense (G, tb) gate_values blocks are only layout-legal when tb is
    # 128-aligned or covers the whole batch; otherwise fall back to (tb, G).
    gv_transposed = (tb == B) or (tb % 128 == 0)

    # Weights / biases kept f32 and VMEM-resident (constant index maps); tiny.
    w1_f = w1.astype(jnp.float32)
    w2_f = w2.astype(jnp.float32)
    w2t = jnp.transpose(w2).astype(jnp.float32)       # [G, MLP] for gv_t matmul
    b1_2d = b1.reshape(1, MLP).astype(jnp.float32)
    b2_row = b2.reshape(1, G).astype(jnp.float32)
    b2_col = b2.reshape(G, 1).astype(jnp.float32)

    kernel = functools.partial(_adaptive_gating_kernel,
                               gate_indices=gate_indices,
                               gv_transposed=gv_transposed,
                               scatter_via_mxu=scatter_via_mxu)

    gv_shape = (G, B) if gv_transposed else (B, G)
    gv_spec = (pl.BlockSpec((G, tb), lambda i: (0, i)) if gv_transposed
               else pl.BlockSpec((tb, G), lambda i: (i, 0)))

    weights_bytes = (H * MLP + MLP + MLP * G + G + G * MLP + G) * 4
    per_step_bytes = 2 * tb * H * in_item + tb * G * 4
    vmem_needed = 2 * per_step_bytes + weights_bytes + (1 << 20)
    vmem_limit = (int(min(vmem_needed, 96 << 20))
                  if vmem_needed > (12 << 20) else None)   # only raise if needed (v5e: 16 MiB default)

    cost = pl.CostEstimate(
        flops=2 * B * (H * MLP + MLP * G) + B * H,
        transcendentals=0,
        bytes_accessed=2 * B * H * in_item + B * G * 4 + weights_bytes)

    gated_hidden, gv_out = pl.pallas_call(
        kernel,
        out_shape=(
            jax.ShapeDtypeStruct((B, H), hidden.dtype),   # gated_hidden
            jax.ShapeDtypeStruct(gv_shape, jnp.float32),  # gate_values
        ),
        grid=grid,
        in_specs=[
            pl.BlockSpec((tb, H), lambda i: (i, 0)),       # hidden, batch-tiled
            pl.BlockSpec((H, MLP), lambda i: (0, 0)),      # W1, resident
            pl.BlockSpec((1, MLP), lambda i: (0, 0)),      # b1, resident
            pl.BlockSpec((MLP, G), lambda i: (0, 0)),      # W2, resident
            pl.BlockSpec((1, G), lambda i: (0, 0)),        # b2 (row), resident
            pl.BlockSpec((G, MLP), lambda i: (0, 0)),      # W2^T, resident
            pl.BlockSpec((G, 1), lambda i: (0, 0)),        # b2 (col), resident
        ],
        out_specs=(
            pl.BlockSpec((tb, H), lambda i: (i, 0)),
            gv_spec,
        ),
        input_output_aliases=({0: 0} if donate_hidden else {}),
        compiler_params=pltpu.CompilerParams(
            dimension_semantics=("parallel",),             # megacore on v7x
            vmem_limit_bytes=vmem_limit),
        cost_estimate=cost,
    )(hidden, w1_f, b1_2d, w2_f, b2_row, w2t, b2_col)

    gate_values = gv_out.T if gv_transposed else gv_out    # callers see [B, G]
    return gated_hidden, gate_values


def _reference(hidden, w1, b1, w2, b2, gate_indices):
    gv = jnp.maximum(hidden @ w1 + b1, 0.0) @ w2 + b2
    gh = hidden
    for i, idx in enumerate(gate_indices):
        gh = gh.at[:, idx].add(gv[:, i])
    return gh, gv


if __name__ == "__main__":
    B = 8           # batch
    H = 64          # hidden_dim
    MLP = 32        # fixed inner width of gate_mlp
    gate_indices = (1, 5, 9, 13)
    G = len(gate_indices)

    key = jax.random.PRNGKey(0)
    k_h, k_w1, k_b1, k_w2, k_b2 = jax.random.split(key, 5)

    hidden = jax.random.normal(k_h, (B, H), jnp.float32)
    # nn.Linear-shaped params, stored as [in, out] so the kernel does x @ W.
    bnd1 = 1.0 / jnp.sqrt(H)
    w1 = jax.random.uniform(k_w1, (H, MLP), jnp.float32, -bnd1, bnd1)
    b1 = jax.random.uniform(k_b1, (MLP,), jnp.float32, -bnd1, bnd1)
    bnd2 = 1.0 / jnp.sqrt(MLP)
    w2 = jax.random.uniform(k_w2, (MLP, G), jnp.float32, -bnd2, bnd2)
    b2 = jax.random.uniform(k_b2, (G,), jnp.float32, -bnd2, bnd2)

    # 1) Single-tile path (grid=(1,), lane-dense gv since tb == B).
    gh, gv = adaptive_gating(hidden, w1, b1, w2, b2, gate_indices)
    jax.block_until_ready((gh, gv))
    ref_gh, ref_gv = _reference(hidden, w1, b1, w2, b2, gate_indices)
    assert gv.shape == (B, G) and gh.shape == (B, H)
    assert jnp.allclose(gv, ref_gv, atol=1e-5, rtol=1e-5)
    assert jnp.allclose(gh, ref_gh, atol=1e-5, rtol=1e-5)

    # 2) MXU-offloaded scatter (v7x option).
    gh_m, gv_m = adaptive_gating(hidden, w1, b1, w2, b2, gate_indices,
                                 scatter_via_mxu=True)
    jax.block_until_ready((gh_m, gv_m))
    assert jnp.allclose(gv_m, ref_gv, atol=1e-5, rtol=1e-5)
    assert jnp.allclose(gh_m, ref_gh, atol=1e-5, rtol=1e-5)

    # 3) Multi-tile path, non-128-aligned tile (grid=(4,), gv falls back to (tb,G)).
    B2 = 32
    hidden2 = jax.random.normal(jax.random.PRNGKey(1), (B2, H), jnp.float32)
    gh2, gv2 = adaptive_gating(hidden2, w1, b1, w2, b2, gate_indices, block_b=8)
    jax.block_until_ready((gh2, gv2))
    ref_gh2, ref_gv2 = _reference(hidden2, w1, b1, w2, b2, gate_indices)
    assert jnp.allclose(gv2, ref_gv2, atol=1e-5, rtol=1e-5)
    assert jnp.allclose(gh2, ref_gh2, atol=1e-5, rtol=1e-5)

    # 4) Multi-tile, 128-aligned tile (grid=(2,), lane-dense transposed gv store).
    B3 = 512
    hidden3 = jax.random.normal(jax.random.PRNGKey(2), (B3, H), jnp.float32)
    gh3, gv3 = adaptive_gating(hidden3, w1, b1, w2, b2, gate_indices, block_b=256)
    jax.block_until_ready((gh3, gv3))
    ref_gh3, ref_gv3 = _reference(hidden3, w1, b1, w2, b2, gate_indices)
    assert jnp.allclose(gv3, ref_gv3, atol=1e-5, rtol=1e-5)
    assert jnp.allclose(gh3, ref_gh3, atol=1e-5, rtol=1e-5)

    # 5) Duplicate gate indices accumulate (matches PyTorch's sequential +=).
    dup_idx = (1, 5, 5, 13)
    gh_d, gv_d = adaptive_gating(hidden, w1, b1, w2, b2, dup_idx)
    jax.block_until_ready((gh_d, gv_d))
    ref_gh_d, ref_gv_d = _reference(hidden, w1, b1, w2, b2, dup_idx)
    assert jnp.allclose(gv_d, ref_gv_d, atol=1e-5, rtol=1e-5)
    assert jnp.allclose(gh_d, ref_gh_d, atol=1e-5, rtol=1e-5)

    # 6) bf16 I/O smoke test (halves the dominant [B,H] HBM traffic; f32 accum).
    B4 = 256
    hidden4 = jax.random.normal(jax.random.PRNGKey(3), (B4, H),
                                jnp.float32).astype(jnp.bfloat16)
    gh4, gv4 = adaptive_gating(hidden4, w1, b1, w2, b2, gate_indices)
    jax.block_until_ready((gh4, gv4))
    ref_gh4, ref_gv4 = _reference(hidden4.astype(jnp.float32), w1, b1, w2, b2,
                                  gate_indices)
    assert gh4.dtype == jnp.bfloat16
    assert jnp.allclose(gv4, ref_gv4, atol=1e-3, rtol=1e-3)
    assert jnp.allclose(gh4.astype(jnp.float32), ref_gh4, atol=3e-2, rtol=3e-2)

    print("KERNEL_OK")
</pallas_src>

<mosaic_0001>
module attributes {stable_mosaic.version = 11 : i64} {
  func.func @_adaptive_gating_kernel(%arg0: i32, %arg1: memref<8x64xf32, #tpu.memory_space<vmem>>, %arg2: memref<64x32xf32, #tpu.memory_space<vmem>>, %arg3: memref<1x32xf32, #tpu.memory_space<vmem>>, %arg4: memref<32x4xf32, #tpu.memory_space<vmem>>, %arg5: memref<1x4xf32, #tpu.memory_space<vmem>>, %arg6: memref<4x32xf32, #tpu.memory_space<vmem>>, %arg7: memref<4x1xf32, #tpu.memory_space<vmem>>, %arg8: memref<8x64xf32, #tpu.memory_space<vmem>>, %arg9: memref<4x8xf32, #tpu.memory_space<vmem>>) attributes {dimension_semantics = [#tpu.dimension_semantics<parallel>], iteration_bounds = array<i64: 1>, scalar_prefetch = 0 : i64, scratch_operands = 0 : i64, tpu.core_type = #tpu.core_type<tc>, window_params = [{transform_indices = @transform_0, window_bounds = array<i64: 8, 64>}, {pipeline_mode = #tpu.pipeline_mode<synchronous>, transform_indices = @transform_1, window_bounds = array<i64: 64, 32>}, {pipeline_mode = #tpu.pipeline_mode<synchronous>, transform_indices = @transform_2, window_bounds = array<i64: 1, 32>}, {pipeline_mode = #tpu.pipeline_mode<synchronous>, transform_indices = @transform_3, window_bounds = array<i64: 32, 4>}, {pipeline_mode = #tpu.pipeline_mode<synchronous>, transform_indices = @transform_4, window_bounds = array<i64: 1, 4>}, {pipeline_mode = #tpu.pipeline_mode<synchronous>, transform_indices = @transform_5, window_bounds = array<i64: 4, 32>}, {pipeline_mode = #tpu.pipeline_mode<synchronous>, transform_indices = @transform_6, window_bounds = array<i64: 4, 1>}, {transform_indices = @transform_7, window_bounds = array<i64: 8, 64>}, {transform_indices = @transform_8, window_bounds = array<i64: 4, 8>}]} {
    %c0 = arith.constant 0 : index
    %c0_0 = arith.constant 0 : index
    %0 = vector.load %arg1[%c0, %c0_0] : memref<8x64xf32, #tpu.memory_space<vmem>>, vector<8x64xf32>
    %c0_1 = arith.constant 0 : index
    %c0_2 = arith.constant 0 : index
    %1 = vector.load %arg2[%c0_1, %c0_2] : memref<64x32xf32, #tpu.memory_space<vmem>>, vector<64x32xf32>
    %cst = arith.constant dense<0.000000e+00> : vector<8x32xf32>
    %2 = tpu.matmul %0, %1, %cst {dimension_numbers = #tpu.dot_dimension_numbers<[1], [0], [0], [1], [0, 0, 1, 1], [], []>} : vector<8x64xf32>, vector<64x32xf32>, vector<8x32xf32> -> vector<8x32xf32>
    %c0_3 = arith.constant 0 : index
    %c0_4 = arith.constant 0 : index
    %3 = vector.load %arg3[%c0_3, %c0_4] : memref<1x32xf32, #tpu.memory_space<vmem>>, vector<1x32xf32>
    %4 = vector.broadcast %3 : vector<1x32xf32> to vector<8x32xf32>
    %5 = arith.addf %2, %4 : vector<8x32xf32>
    %cst_5 = arith.constant 0.000000e+00 : f32
    %6 = vector.broadcast %cst_5 : f32 to vector<8x32xf32>
    %7 = arith.maximumf %5, %6 : vector<8x32xf32>
    %c0_6 = arith.constant 0 : index
    %c0_7 = arith.constant 0 : index
    %8 = vector.load %arg4[%c0_6, %c0_7] : memref<32x4xf32, #tpu.memory_space<vmem>>, vector<32x4xf32>
    %cst_8 = arith.constant dense<0.000000e+00> : vector<8x4xf32>
    %9 = tpu.matmul %7, %8, %cst_8 {dimension_numbers = #tpu.dot_dimension_numbers<[1], [0], [0], [1], [0, 0, 1, 1], [], []>} : vector<8x32xf32>, vector<32x4xf32>, vector<8x4xf32> -> vector<8x4xf32>
    %c0_9 = arith.constant 0 : index
    %c0_10 = arith.constant 0 : index
    %10 = vector.load %arg5[%c0_9, %c0_10] : memref<1x4xf32, #tpu.memory_space<vmem>>, vector<1x4xf32>
    %11 = vector.broadcast %10 : vector<1x4xf32> to vector<8x4xf32>
    %12 = arith.addf %9, %11 : vector<8x4xf32>
    %c0_11 = arith.constant 0 : index
    %c0_12 = arith.constant 0 : index
    %13 = vector.load %arg6[%c0_11, %c0_12] : memref<4x32xf32, #tpu.memory_space<vmem>>, vector<4x32xf32>
    %cst_13 = arith.constant dense<0.000000e+00> : vector<4x8xf32>
    %14 = tpu.matmul %13, %7, %cst_13 {dimension_numbers = #tpu.dot_dimension_numbers<[1], [1], [0], [0], [0, 0, 1, 0], [], []>} : vector<4x32xf32>, vector<8x32xf32>, vector<4x8xf32> -> vector<4x8xf32>
    %c0_14 = arith.constant 0 : index
    %c0_15 = arith.constant 0 : index
    %15 = vector.load %arg7[%c0_14, %c0_15] : memref<4x1xf32, #tpu.memory_space<vmem>>, vector<4x1xf32>
    %16 = vector.broadcast %15 : vector<4x1xf32> to vector<4x8xf32>
    %17 = arith.addf %14, %16 : vector<4x8xf32>
    %c0_16 = arith.constant 0 : index
    %c0_17 = arith.constant 0 : index
    %18 = vector.load %arg9[%c0_16, %c0_17] : memref<4x8xf32, #tpu.memory_space<vmem>>, vector<4x8xf32>
    tpu.vector_store %arg9[%c0_16, %c0_17], %17 {strides = array<i32>} : memref<4x8xf32, #tpu.memory_space<vmem>>, vector<4x8xf32>,
    %19 = tpu.iota {dimensions = array<i32: 1>} : vector<1x64xi32>
    %c1_i32 = arith.constant 1 : i32
    %20 = vector.broadcast %c1_i32 : i32 to vector<1x64xi32>
    %21 = arith.cmpi eq, %19, %20 : vector<1x64xi32>
    %22 = vector.extract_strided_slice %12 {offsets = [0, 0], sizes = [8, 1], strides = [1, 1]} : vector<8x4xf32> to vector<8x1xf32>
    %cst_18 = arith.constant 0.000000e+00 : f32
    %23 = vector.shape_cast %21 : vector<1x64xi1> to vector<1x64xi1>
    %24 = vector.broadcast %23 : vector<1x64xi1> to vector<8x64xi1>
    %25 = vector.shape_cast %22 : vector<8x1xf32> to vector<8x1xf32>
    %26 = vector.broadcast %25 : vector<8x1xf32> to vector<8x64xf32>
    %27 = vector.broadcast %cst_18 : f32 to vector<8x64xf32>
    %28 = arith.select %24, %26, %27 : vector<8x64xi1>, vector<8x64xf32>
    %29 = arith.addf %0, %28 : vector<8x64xf32>
    %c5_i32 = arith.constant 5 : i32
    %30 = vector.broadcast %c5_i32 : i32 to vector<1x64xi32>
    %31 = arith.cmpi eq, %19, %30 : vector<1x64xi32>
    %32 = vector.extract_strided_slice %12 {offsets = [0, 1], sizes = [8, 1], strides = [1, 1]} : vector<8x4xf32> to vector<8x1xf32>
    %cst_19 = arith.constant 0.000000e+00 : f32
    %33 = vector.shape_cast %31 : vector<1x64xi1> to vector<1x64xi1>
    %34 = vector.broadcast %33 : vector<1x64xi1> to vector<8x64xi1>
    %35 = vector.shape_cast %32 : vector<8x1xf32> to vector<8x1xf32>
    %36 = vector.broadcast %35 : vector<8x1xf32> to vector<8x64xf32>
    %37 = vector.broadcast %cst_19 : f32 to vector<8x64xf32>
    %38 = arith.select %34, %36, %37 : vector<8x64xi1>, vector<8x64xf32>
    %39 = arith.addf %29, %38 : vector<8x64xf32>
    %c9_i32 = arith.constant 9 : i32
    %40 = vector.broadcast %c9_i32 : i32 to vector<1x64xi32>
    %41 = arith.cmpi eq, %19, %40 : vector<1x64xi32>
    %42 = vector.extract_strided_slice %12 {offsets = [0, 2], sizes = [8, 1], strides = [1, 1]} : vector<8x4xf32> to vector<8x1xf32>
    %cst_20 = arith.constant 0.000000e+00 : f32
    %43 = vector.shape_cast %41 : vector<1x64xi1> to vector<1x64xi1>
    %44 = vector.broadcast %43 : vector<1x64xi1> to vector<8x64xi1>
    %45 = vector.shape_cast %42 : vector<8x1xf32> to vector<8x1xf32>
    %46 = vector.broadcast %45 : vector<8x1xf32> to vector<8x64xf32>
    %47 = vector.broadcast %cst_20 : f32 to vector<8x64xf32>
    %48 = arith.select %44, %46, %47 : vector<8x64xi1>, vector<8x64xf32>
    %49 = arith.addf %39, %48 : vector<8x64xf32>
    %c13_i32 = arith.constant 13 : i32
    %50 = vector.broadcast %c13_i32 : i32 to vector<1x64xi32>
    %51 = arith.cmpi eq, %19, %50 : vector<1x64xi32>
    %52 = vector.extract_strided_slice %12 {offsets = [0, 3], sizes = [8, 1], strides = [1, 1]} : vector<8x4xf32> to vector<8x1xf32>
    %cst_21 = arith.constant 0.000000e+00 : f32
    %53 = vector.shape_cast %51 : vector<1x64xi1> to vector<1x64xi1>
    %54 = vector.broadcast %53 : vector<1x64xi1> to vector<8x64xi1>
    %55 = vector.shape_cast %52 : vector<8x1xf32> to vector<8x1xf32>
    %56 = vector.broadcast %55 : vector<8x1xf32> to vector<8x64xf32>
    %57 = vector.broadcast %cst_21 : f32 to vector<8x64xf32>
    %58 = arith.select %54, %56, %57 : vector<8x64xi1>, vector<8x64xf32>
    %59 = arith.addf %49, %58 : vector<8x64xf32>
    %c0_22 = arith.constant 0 : index
    %c0_23 = arith.constant 0 : index
    %60 = vector.load %arg8[%c0_22, %c0_23] : memref<8x64xf32, #tpu.memory_space<vmem>>, vector<8x64xf32>
    tpu.vector_store %arg8[%c0_22, %c0_23], %59 {strides = array<i32>} : memref<8x64xf32, #tpu.memory_space<vmem>>, vector<8x64xf32>,
    return
  }
  func.func @transform_0(%arg0: i32) -> (i32, i32) {
    %c0_i32 = arith.constant 0 : i32
    %c0_i32_0 = arith.constant 0 : i32
    return %arg0, %c0_i32 : i32, i32
  }
  func.func @transform_1(%arg0: i32) -> (i32, i32) {
    %c0_i32 = arith.constant 0 : i32
    %c0_i32_0 = arith.constant 0 : i32
    %c0_i32_1 = arith.constant 0 : i32
    return %c0_i32, %c0_i32_0 : i32, i32
  }
  func.func @transform_2(%arg0: i32) -> (i32, i32) {
    %c0_i32 = arith.constant 0 : i32
    %c0_i32_0 = arith.constant 0 : i32
    %c0_i32_1 = arith.constant 0 : i32
    return %c0_i32, %c0_i32_0 : i32, i32
  }
  func.func @transform_3(%arg0: i32) -> (i32, i32) {
    %c0_i32 = arith.constant 0 : i32
    %c0_i32_0 = arith.constant 0 : i32
    %c0_i32_1 = arith.constant 0 : i32
    return %c0_i32, %c0_i32_0 : i32, i32
  }
  func.func @transform_4(%arg0: i32) -> (i32, i32) {
    %c0_i32 = arith.constant 0 : i32
    %c0_i32_0 = arith.constant 0 : i32
    %c0_i32_1 = arith.constant 0 : i32
    return %c0_i32, %c0_i32_0 : i32, i32
  }
  func.func @transform_5(%arg0: i32) -> (i32, i32) {
    %c0_i32 = arith.constant 0 : i32
    %c0_i32_0 = arith.constant 0 : i32
    %c0_i32_1 = arith.constant 0 : i32
    return %c0_i32, %c0_i32_0 : i32, i32
  }
  func.func @transform_6(%arg0: i32) -> (i32, i32) {
    %c0_i32 = arith.constant 0 : i32
    %c0_i32_0 = arith.constant 0 : i32
    %c0_i32_1 = arith.constant 0 : i32
    return %c0_i32, %c0_i32_0 : i32, i32
  }
  func.func @transform_7(%arg0: i32) -> (i32, i32) {
    %c0_i32 = arith.constant 0 : i32
    %c0_i32_0 = arith.constant 0 : i32
    return %arg0, %c0_i32 : i32, i32
  }
  func.func @transform_8(%arg0: i32) -> (i32, i32) {
    %c0_i32 = arith.constant 0 : i32
    %c0_i32_0 = arith.constant 0 : i32
    return %c0_i32, %arg0 : i32, i32
  }
}

</mosaic_0001>

<bundles_post_ra>
// kernel: adaptive_gating.1
= control target key start
LH: loop header
LB: loop body
LE: loop exit
PB: predicated region body
PF: predicated region fallthrough
CT: control target
= control target key end

     0   :  { %14 = vsyncpa [#allocation3], 0  ;;  %v471_v1 = vmov 0.0   ;;  %vm472_vm0 = vmmov 0   ;;  %s586_s0 = inlined_call_operand.vmem [shape: f32[8,64], index: 0, kind: input, shape index: {}]   ;;  %s587_s1 = inlined_call_operand.vmem [shape: f32[64,32], index: 1, kind: input, shape index: {}]   ;;  %s588_s2 = inlined_call_operand.vmem [shape: f32[1,32], index: 2, kind: input, shape index: {}]   ;;  %s589_s3 = inlined_call_operand.vmem [shape: f32[32,4], index: 3, kind: input, shape index: {}]   ;;  %s590_s4 = inlined_call_operand.vmem [shape: f32[1,4], index: 4, kind: input, shape index: {}]   ;;  %s591_s5 = inlined_call_operand.vmem [shape: f32[4,32], index: 5, kind: input, shape index: {}]   ;;  %s592_s6 = inlined_call_operand.vmem [shape: f32[4,1], index: 6, kind: input, shape index: {}]   ;;  %s593_s7 = inlined_call_operand.hbm [shape: f32[8,64], index: 7, kind: output, shape index: {0}]   ;;  %s594_s8 = inlined_call_operand.hbm [shape: f32[4,8], index: 8, kind: output, shape index: {1}]  }
   0x1   :  { %v38_v0 = vld [vmem:[%s587_s1 + $0x38] sm:$0xff]  ;;  %378 = vmatprep.subr.mxu0 %v471_v1  ;;  %v37_v2 = vld [vmem:[%s587_s1 + $0x30] sm:$0xff]  ;;  %394 = vmatprep.mubr.msk.f32.mxu0 %vm472_vm0, %v471_v1  ;;  %v36_v3 = vld [vmem:[%s587_s1 + $0x28] sm:$0xff] }
   0x2   :  { %379 = vmatpush3.msra.mxu0 %v38_v0  ;;  %397 = vmatprep.subr.mxu1 %v471_v1  ;;  %v124_v4 = vld [vmem:[%s589_s3 + $0x18] sm:$0xff]  ;;  %v123_v5 = vld [vmem:[%s589_s3 + $0x10] sm:$0xff] }
   0x3   :  { %380 = vmatprep.subr.mxu0 %v471_v1  ;;  %405 = vmatprep.mubr.msk.f32.mxu1 %vm472_vm0, %v471_v1 }
   0x4   :  { %381 = vmatpush3.msra.mxu0 %v37_v2  ;;  %398 = vmatpush3.msra.mxu1 %v124_v4 }
   0x5   :  { %15 = vsyncpa [#allocation5], 0  ;;  %382 = vmatprep.subr.mxu0 %v471_v1  ;;  %v35_v6 = vld [vmem:[%s587_s1 + $0x20] sm:$0xff]  ;;  %399 = vmatprep.subr.mxu1 %v471_v1  ;;  %v34_v7 = vld [vmem:[%s587_s1 + $0x18] sm:$0xff]  ;;  %vm46_vm1 = vcmask 523264   ;;  %vm132_vm2 = vcmask 261120   ;;  %v288_v31 = vlaneseq }
   0x6   :  { %383 = vmatpush3.msra.mxu0 %v36_v3  ;;  %400 = vmatpush3.msra.mxu1 %v123_v5  ;;  %v33_v8 = vld [vmem:[%s587_s1 + $0x10] sm:$0xff]  ;;  %v32_v9 = vld [vmem:[%s587_s1 + $0x8] sm:$0xff]  ;;  %v31_v10 = vld [vmem:[%s587_s1] sm:$0xff]  ;;  %v473_v20 = vmov 2   ;;  %v474_v21 = vmov 0   ;;  %v475_v26 = vmov 3  }
   0x7   :  { %384 = vmatprep.subr.mxu0 %v471_v1  ;;  %401 = vmatprep.subr.mxu1 %v471_v1  ;;  %v30_v11 = vld [vmem:[%s586_s0] sm:$0xff]  ;;  %v122_v12 = vld [vmem:[%s589_s3 + $0x8] sm:$0xff]  ;;  %v476_v27 = vmov 1   ;;  %v289_v32 = vand.u32 127, %v288_v31  ;;  %s478_s12 = smov [#allocation4]   ;;  %vm286_vm7 = vcmask 60416  }
   0x8   :  { %385 = vmatpush3.msra.mxu0 %v35_v6  ;;  %402 = vmatpush3.msra.mxu1 %v122_v12  ;;  %v121_v13 = vld [vmem:[%s589_s3] sm:$0xff]  ;;  %s344_s13 = sshll.u32 %s478_s12, 4  ;;  %s345_s13 = int_to_ptr.vmem [resolvable:$true] %s344_s13 }
   0x9   :  { %386 = vmatprep.subr.mxu0 %v471_v1  ;;  %403 = vmatprep.subr.mxu1 %v471_v1  ;;  %v356_v14 = vld [vmem:[%s588_s2] ss:$0 sm:$0xff]  ;;  %vm290_vm3 = vcmp.eq.s32.totalorder %v289_v32, 1  ;;  %vm300_vm4 = vcmp.eq.s32.totalorder %v289_v32, 5  ;;  %vm309_vm5 = vcmp.eq.s32.totalorder %v289_v32, 9  ;;  %vm318_vm6 = vcmp.eq.s32.totalorder %v289_v32, 13 }
   0xa   :  { %387 = vmatpush3.msra.mxu0 %v34_v7  ;;  %404 = vmatpush3.msra.mxu1 %v121_v13  ;;  %v206_v19 = vld [vmem:[%s591_s5] sm:$0xf] }
   0xb   :  { %388 = vmatprep.subr.mxu0 %v471_v1  ;;  %408 = vmatprep.subr.mxu1 %v471_v1  ;;  %v358_v22 = vld [vmem:[%s590_s4] ss:$0 sm:$0xff]  ;;  %s477_s4 = smov [#allocation2]  }
   0xc   :  { %389 = vmatpush3.msra.mxu0 %v33_v8  ;;  %423 = vset.pattern.permute.xlu1 %v473_v20  ;;  %v207_v30 = vld [vmem:[%s592_s6] sm:$0xf]  ;;  %s334_s6 = sshll.u32 %s477_s4, 4  ;;  %s335_s6 = int_to_ptr.vmem [resolvable:$true] %s334_s6 }
   0xd   :  { %390 = vmatprep.subr.mxu0 %v471_v1  ;;  %421 = vset.pattern.permute.xlu0 %v474_v21  ;;  %s427_s14 = scalar_lea.vmem %s335_s6, 128  ;;  %p432_p1 = scmp.lt.s32.totalorder %s335_s6, %s335_s6 }
   0xe   :  { %391 = vmatpush3.msra.mxu0 %v32_v9  ;;  %p428_p0 = scmp.ne.s32.totalorder %s335_s6, %s427_s14  ;;  %p433_p2 = scmp.lt.s32.totalorder %s427_s14, %s427_s14 }
   0xf   :  { %392 = vmatprep.subr.mxu0 %v471_v1 }
  0x10   :  { %393 = vmatpush3.msra.mxu0 %v31_v10  ;;  %p434_p3 = por %p433_p2, %p432_p1 }
  0x11   :  { %395 = vmatmul.mubr.msk.f32.vlgmr.msra.gmra.mxu0 %vm46_vm1, %v30_v11 }
  0x12   :  { %p435_p4 = pnand %p434_p3, %p428_p0 }
  0xd1   :  { %v116_v15 = vpop.f32.mrf.mxu0 }
  0xd2   :  { %v117_v16 = vadd.f32 %v356_v14, %v116_v15 }
  0xd3   :  { %v396_v17 = vpop.f32.mrf.mxu0 }
  0xd4   :  { %v120_v18 = vmax.f32 %v117_v16, 0.0 }
  0xd6   :  { %406 = vmatmul.mubr.msk.f32.vlgmr.msra.gmra.mxu1 %vm132_vm2, %v120_v18 }
  0xd7   :  { %409 = vmatpush3.xpose.msk.msra.mxu1 %vm132_vm2, %v120_v18  ;;  %410 = vmatprep.mubr.msk.f32.mxu1 %vm472_vm0, %v471_v1 }
  0xda   :  { %411 = vmatmul.mubr.msk.f32.vlgmr.msra.gmra.mxu1 %vm132_vm2, %v206_v19 }
 0x196   :  { %v202_v23 = vpop.f32.mrf.mxu1 }
 0x197   :  { %v203_v24 = vadd.f32 %v358_v22, %v202_v23 }
 0x198   :  { %v407_v25 = vpop.f32.mrf.mxu1 }
 0x199   :  { %313 = vperm.xlu1 %423, %v203_v24   ;;  %295 = vperm.xlu0 %421, %v203_v24  }
 0x19a   :  { %v282_v28 = vpop.f32.mrf.mxu1 }
 0x19c   :  { %v412_v29 = vpop.f32.mrf.mxu1 }
 0x19d   :  { %424 = vset.pattern.permute.xlu1 %v475_v26  ;;  %422 = vset.pattern.permute.xlu0 %v476_v27 }
 0x19e   :  { %322 = vperm.xlu1 %424, %v203_v24   ;;  %304 = vperm.xlu0 %422, %v203_v24  }
 0x1a2   :  { %425 = vset.pattern.permute.xlu1 %v474_v21  ;;  %426 = vset.pattern.permute.xlu0 %v475_v26 }
 0x1a3   :  { %210 = vperm.xlu1 %425, %v207_v30  }
 0x214   :  { %v314_v33 = vpop.permute.xlu1 %313  ;;  %v296_v34 = vpop.permute.xlu0 %295 }
 0x215   :  { %v298_v35 = vsel %vm290_vm3, %v296_v34, 0.0  ;;  %v316_v41 = vsel %vm309_vm5, %v314_v33, 0.0 }
 0x216   :  { %v299_v36 = vadd.f32 %v298_v35, %v30_v11 }
 0x219   :  { %v323_v37 = vpop.permute.xlu1 %322  ;;  %v305_v38 = vpop.permute.xlu0 %304 }
 0x21a   :  { %v307_v39 = vsel %vm300_vm4, %v305_v38, 0.0  ;;  %v325_v43 = vsel %vm318_vm6, %v323_v37, 0.0 }
 0x21b   :  { %v308_v40 = vadd.f32 %v307_v39, %v299_v36 }
 0x21d   :  { %v317_v42 = vadd.f32 %v316_v41, %v308_v40 }
 0x21e   :  { %v211_v44 = vpop.permute.xlu1 %210 }
 0x21f   :  { %v283_v45 = vadd.f32 %v282_v28, %v211_v44  ;;  %v326_v46 = vadd.f32 %v325_v43, %v317_v42 }
 0x221   :  { %327 = vst.msk [vmem:[#allocation2] sm:$0xff] %vm46_vm1, %v326_v46 }
 0x222   :  { %287 = vst.msk [vmem:[#allocation4] sm:$0xf] %vm286_vm7, %v283_v45 }
 0x223   :  { %438 = shalt.err (!%p435_p4)
}
 0x224   :  { %337 = dma.vmem_to_hbm [thread:$0]  %s335_s6, 128, %s593_s7, [#allocation3]  }
 0x225   :  { %s447_s17 = scalar_lea.vmem %s345_s13, 64  ;;  %p452_p6 = scmp.lt.s32.totalorder %s345_s13, %s345_s13 }
 0x226   :  { %p448_p5 = scmp.ne.s32.totalorder %s345_s13, %s447_s17  ;;  %p453_p7 = scmp.lt.s32.totalorder %s447_s17, %s447_s17 }
 0x228   :  { %p454_p8 = por %p453_p7, %p452_p6 }
 0x22a   :  { %p455_p9 = pnand %p454_p8, %p448_p5 }
 0x22c   :  { %458 = shalt.err (!%p455_p9)
}
 0x22d   :  { %347 = dma.vmem_to_hbm [thread:$0]  %s345_s13, 64, %s594_s8, [#allocation5]  }
 0x22e   :  { %467 = dma.done.wait [#allocation3], 128  }
 0x22f   :  { %468 = vsyncadd [#allocation3], 4294967168 }
 0x230   :  { %469 = dma.done.wait [#allocation5], 64  }
 0x231   :  { %470 = vsyncadd [#allocation5], 4294967232 }
 0x232   :  { %354 = vsyncpa [#allocation3], 1 }
 0x233   :  { %355 = vsyncpa [#allocation5], 1 }

</bundles_post_ra>
